<compile_context>
chip_gen: v6e
topology: v6e:2x2x1
jax: 0.10.0
libtpu: 0.0.40
codegen_flags: <defaults>
</compile_context>

<pallas_src>
import math
import jax
import jax.numpy as jnp
from jax.experimental import pallas as pl
from jax.experimental.pallas import tpu as pltpu


def _critic_kernel(sa_ref, w1_ref, b1_ref, w2_ref, b2_ref, w3_ref, b3_ref,
                   w4_ref, b4_ref, q_ref):
    # sa_ref : [S+A, bt] bf16       (shared activations, batch on lanes)
    # w1_ref : [eb*H, S+A] bf16     b1_ref: [eb*H, 1] f32
    # w2/w3  : [eb, H, H] bf16      b2/b3 : [eb, H, 1] f32
    # w4_ref : [eb, H, 1] f32       b4_ref: [eb, 1, 1] f32
    # q_ref  : [1, eb, bt] f32
    eb, H, _ = w2_ref.shape
    sa = sa_ref[...]

    # Layer 1 fused across the ensemble block: one big-M MXU matmul, then a
    # block-wide bias add + ReLU (each output row only uses its own member's
    # weights, so per-member math is unchanged).
    h1 = jnp.dot(w1_ref[...], sa, preferred_element_type=jnp.float32)   # [eb*H, bt]
    h1 = jnp.maximum(h1 + b1_ref[...], 0.0)

    rows = []
    for e in range(eb):                     # eb is a small compile-time constant
        h = h1[e * H:(e + 1) * H]                                        # [H, bt]
        h = jnp.dot(w2_ref[e], h.astype(jnp.bfloat16),
                    preferred_element_type=jnp.float32) + b2_ref[e]
        h = jnp.maximum(h, 0.0)
        h = jnp.dot(w3_ref[e], h.astype(jnp.bfloat16),
                    preferred_element_type=jnp.float32) + b3_ref[e]
        h = jnp.maximum(h, 0.0)
        # output layer (out_features == 1): VPU multiply + cross-sublane reduce
        rows.append(jnp.sum(h * w4_ref[e], axis=0, keepdims=True) + b4_ref[e])

    # Single lane-dense (eb, bt) store per grid step.
    q_ref[0] = jnp.concatenate(rows, axis=0)


def _pick_batch_tile(b_pad, max_tile=256):
    """Largest multiple of 128 (<= max_tile) dividing the padded batch."""
    bt = min(b_pad, max_tile)
    while b_pad % bt:
        bt -= 128
    return bt


def _pick_ensemble_block(num_critics, hidden_dim, in_dim, bt,
                         budget_bytes=16 * 1024 * 1024):
    """Largest divisor of E (<= min(8, E//2)) whose per-step footprint fits.

    Budgets weight blocks *with double buffering*, the shared-activation and
    output blocks, and the f32 intermediates (h1 + per-member h)."""
    def block_bytes(eb):
        w = eb * (hidden_dim * in_dim + 2 * hidden_dim * hidden_dim) * 2   # bf16 w1..w3
        w += eb * (4 * hidden_dim + 1) * 4                                 # f32 biases + w4
        act = (in_dim * bt * 2 + eb * bt * 4) * 2                          # sa + out (x2 bufs)
        inter = (eb + 2) * hidden_dim * bt * 4                             # h1 + live h
        return 2 * w + act + inter
    cap = max(1, min(8, num_critics // 2 if num_critics >= 2 else 1))
    eb = 1
    for d in range(1, num_critics + 1):
        if num_critics % d == 0 and d <= cap and block_bytes(d) <= budget_bytes:
            eb = d
    return eb


def _prepare_params(params):
    """PyTorch layout (w [E, in, out], b [E, 1, out]) -> kernel layout.

    w1 is transposed and flattened to [E*H, S+A] so layer 1 can run as one
    fused matmul per ensemble block; w2/w3 become [E, H, H] (transposed) bf16;
    biases become [*, 1]-shaped f32 columns; w4 keeps its natural [E, H, 1].
    In a training loop this should be computed once per parameter update.
    """
    # TODO(synk): when weight-DMA-bound at small batch, store w2/w3 as fp8
    # (v7x) / int8 (v6e) with per-row scales folded into the f32 epilogue.
    (w1, b1), (w2, b2), (w3, b3), (w4, b4) = params
    E, in_dim, H = w1.shape
    return dict(
        w1=jnp.swapaxes(w1, 1, 2).reshape(E * H, in_dim).astype(jnp.bfloat16),
        b1=jnp.swapaxes(b1, 1, 2).reshape(E * H, 1).astype(jnp.float32),
        w2=jnp.swapaxes(w2, 1, 2).astype(jnp.bfloat16),     # [E, H, H]
        b2=jnp.swapaxes(b2, 1, 2).astype(jnp.float32),      # [E, H, 1]
        w3=jnp.swapaxes(w3, 1, 2).astype(jnp.bfloat16),
        b3=jnp.swapaxes(b3, 1, 2).astype(jnp.float32),
        w4=w4.astype(jnp.float32),                          # [E, H, 1] (no swap)
        b4=b4.astype(jnp.float32),                          # [E, 1, 1]
    )


def vectorized_critic_forward(state, action, params):
    """state: [B, state_dim], action: [B, action_dim] -> q_values: [E, B]."""
    state = state.astype(jnp.float32)
    action = action.astype(jnp.float32)
    B, S = state.shape
    A = action.shape[-1]
    in_dim = S + A

    kp = _prepare_params(params)
    E, H, _ = kp["w2"].shape

    # Batch on the lane axis, padded to a multiple of 128 (lane-dense I/O).
    B_pad = ((B + 127) // 128) * 128
    sa_t = jnp.concatenate([state, action], axis=-1).astype(jnp.bfloat16).T  # [S+A, B]
    sa_t = jnp.pad(sa_t, ((0, 0), (0, B_pad - B)))                           # [S+A, B_pad]

    bt = _pick_batch_tile(B_pad)
    eb = _pick_ensemble_block(E, H, in_dim, bt)
    G = E // eb
    grid = (G, B_pad // bt)      # ensemble outer, batch innermost (weights stay resident)

    ens2 = lambda g, b: (g, 0)        # [E*H, *] blocks (layer-1 fused weight / bias)
    ens3 = lambda g, b: (g, 0, 0)     # [E, H, *] per-member blocks
    act = lambda g, b: (0, b)         # shared activations: only batch index moves

    out = pl.pallas_call(
        _critic_kernel,
        out_shape=jax.ShapeDtypeStruct((G, eb, B_pad), jnp.float32),
        grid_spec=pltpu.PrefetchScalarGridSpec(
            num_scalar_prefetch=0,
            grid=grid,
            in_specs=[
                pl.BlockSpec((in_dim, bt), act),        # [S+A, bt] bf16
                pl.BlockSpec((eb * H, in_dim), ens2),   # w1 fused (bf16)
                pl.BlockSpec((eb * H, 1), ens2),        # b1
                pl.BlockSpec((eb, H, H), ens3),         # w2 (bf16)
                pl.BlockSpec((eb, H, 1), ens3),         # b2
                pl.BlockSpec((eb, H, H), ens3),         # w3 (bf16)
                pl.BlockSpec((eb, H, 1), ens3),         # b3
                pl.BlockSpec((eb, H, 1), ens3),         # w4 (f32)
                pl.BlockSpec((eb, 1, 1), ens3),         # b4
            ],
            out_specs=pl.BlockSpec((1, eb, bt), lambda g, b: (g, 0, b)),
        ),
        compiler_params=pltpu.CompilerParams(
            # Both axes are independent; on v7x the ensemble axis (>= 2 steps
            # when E >= 2) shards across the two TensorCores.
            dimension_semantics=("parallel", "parallel"),
            vmem_limit_bytes=48 * 1024 * 1024,
        ),
    )(sa_t, kp["w1"], kp["b1"], kp["w2"], kp["b2"], kp["w3"], kp["b3"],
      kp["w4"], kp["b4"])

    return out.reshape(E, B_pad)[:, :B]   # [E, B], matches torch .squeeze(-1)


def init_params(key, state_dim, action_dim, hidden_dim, num_critics):
    """Deterministic init mirroring VectorizedCritic.__init__ shapes/ranges."""
    in_dim = state_dim + action_dim
    dims = [(in_dim, hidden_dim), (hidden_dim, hidden_dim),
            (hidden_dim, hidden_dim), (hidden_dim, 1)]
    keys = jax.random.split(key, 8)
    params = []
    for li, (fi, fo) in enumerate(dims):
        wk, bk = keys[2 * li], keys[2 * li + 1]
        if li < 3:
            # kaiming_uniform_(a=sqrt(5)) -> bound = 1/sqrt(fan_in); bias = 0.1
            bound = 1.0 / math.sqrt(fi)
            w = jax.random.uniform(wk, (num_critics, fi, fo), jnp.float32, -bound, bound)
            b = jnp.full((num_critics, 1, fo), 0.1, jnp.float32)
        else:
            w = jax.random.uniform(wk, (num_critics, fi, fo), jnp.float32, -0.003, 0.003)
            b = jax.random.uniform(bk, (num_critics, 1, fo), jnp.float32, -0.003, 0.003)
        params.append((w, b))
    return params


def reference_forward(state, action, params):
    """Pure-JAX reference mirroring the kernel's mixed precision (bf16 matmul
    operands for layers 1-3, f32 accumulation/bias/ReLU, f32 final layer)."""
    (w1, b1), (w2, b2), (w3, b3), (w4, b4) = params
    x = jnp.concatenate([state, action], axis=-1).astype(jnp.float32)
    E = w1.shape[0]
    h = jnp.broadcast_to(x[None], (E,) + x.shape)
    for w, b in ((w1, b1), (w2, b2), (w3, b3)):
        h = jnp.einsum('ebi,eio->ebo', h.astype(jnp.bfloat16), w.astype(jnp.bfloat16),
                       preferred_element_type=jnp.float32) + b
        h = jax.nn.relu(h)
    q = jnp.einsum('ebi,eio->ebo', h, w4, preferred_element_type=jnp.float32) + b4
    return q[..., 0]


if __name__ == "__main__":
    state_dim, action_dim, hidden_dim, num_critics = 8, 4, 32, 4
    batch = 8

    key = jax.random.PRNGKey(0)
    k_p, k_s, k_a = jax.random.split(key, 3)
    params = init_params(k_p, state_dim, action_dim, hidden_dim, num_critics)
    state = jax.random.normal(k_s, (batch, state_dim), jnp.float32)
    action = jax.random.normal(k_a, (batch, action_dim), jnp.float32)

    fwd = jax.jit(vectorized_critic_forward)
    q = jax.block_until_ready(fwd(state, action, params))

    q_ref = reference_forward(state, action, params)
    assert q.shape == (num_critics, batch), q.shape
    assert jnp.allclose(q, q_ref, atol=1e-3, rtol=1e-3), (q, q_ref)

    print("KERNEL_OK")
</pallas_src>

<mosaic_0001>
module attributes {stable_mosaic.version = 11 : i64} {
  func.func @_critic_kernel(%arg0: i32, %arg1: i32, %arg2: memref<12x128xbf16, #tpu.memory_space<vmem>>, %arg3: memref<64x12xbf16, #tpu.memory_space<vmem>>, %arg4: memref<64x1xf32, #tpu.memory_space<vmem>>, %arg5: memref<2x32x32xbf16, #tpu.memory_space<vmem>>, %arg6: memref<2x32x1xf32, #tpu.memory_space<vmem>>, %arg7: memref<2x32x32xbf16, #tpu.memory_space<vmem>>, %arg8: memref<2x32x1xf32, #tpu.memory_space<vmem>>, %arg9: memref<2x32x1xf32, #tpu.memory_space<vmem>>, %arg10: memref<2x1x1xf32, #tpu.memory_space<vmem>>, %arg11: memref<1x2x128xf32, #tpu.memory_space<vmem>>) attributes {dimension_semantics = [#tpu.dimension_semantics<parallel>, #tpu.dimension_semantics<parallel>], iteration_bounds = array<i64: 2, 1>, scalar_prefetch = 0 : i64, scratch_operands = 0 : i64, tpu.core_type = #tpu.core_type<tc>, window_params = [{transform_indices = @transform_0, window_bounds = array<i64: 12, 128>}, {transform_indices = @transform_1, window_bounds = array<i64: 64, 12>}, {transform_indices = @transform_2, window_bounds = array<i64: 64, 1>}, {transform_indices = @transform_3, window_bounds = array<i64: 2, 32, 32>}, {transform_indices = @transform_4, window_bounds = array<i64: 2, 32, 1>}, {transform_indices = @transform_5, window_bounds = array<i64: 2, 32, 32>}, {transform_indices = @transform_6, window_bounds = array<i64: 2, 32, 1>}, {transform_indices = @transform_7, window_bounds = array<i64: 2, 32, 1>}, {transform_indices = @transform_8, window_bounds = array<i64: 2, 1, 1>}, {transform_indices = @transform_9, window_bounds = array<i64: 1, 2, 128>}]} {
    %c0 = arith.constant 0 : index
    %c0_0 = arith.constant 0 : index
    %0 = vector.load %arg2[%c0, %c0_0] : memref<12x128xbf16, #tpu.memory_space<vmem>>, vector<12x128xbf16>
    %c0_1 = arith.constant 0 : index
    %c0_2 = arith.constant 0 : index
    %1 = vector.load %arg3[%c0_1, %c0_2] : memref<64x12xbf16, #tpu.memory_space<vmem>>, vector<64x12xbf16>
    %cst = arith.constant dense<0.000000e+00> : vector<64x128xf32>
    %2 = tpu.matmul %1, %0, %cst {dimension_numbers = #tpu.dot_dimension_numbers<[1], [0], [0], [1], [0, 0, 1, 1], [], []>} : vector<64x12xbf16>, vector<12x128xbf16>, vector<64x128xf32> -> vector<64x128xf32>
    %c0_3 = arith.constant 0 : index
    %c0_4 = arith.constant 0 : index
    %3 = vector.load %arg4[%c0_3, %c0_4] : memref<64x1xf32, #tpu.memory_space<vmem>>, vector<64x1xf32>
    %4 = vector.broadcast %3 : vector<64x1xf32> to vector<64x128xf32>
    %5 = arith.addf %2, %4 : vector<64x128xf32>
    %cst_5 = arith.constant 0.000000e+00 : f32
    %6 = vector.broadcast %cst_5 : f32 to vector<64x128xf32>
    %7 = arith.maximumf %5, %6 : vector<64x128xf32>
    %8 = vector.extract_strided_slice %7 {offsets = [0, 0], sizes = [32, 128], strides = [1, 1]} : vector<64x128xf32> to vector<32x128xf32>
    %c0_6 = arith.constant 0 : index
    %c0_7 = arith.constant 0 : index
    %c0_8 = arith.constant 0 : index
    %9 = vector.load %arg5[%c0_6, %c0_7, %c0_8] : memref<2x32x32xbf16, #tpu.memory_space<vmem>>, vector<1x32x32xbf16>
    %10 = vector.shape_cast %9 : vector<1x32x32xbf16> to vector<32x32xbf16>
    %11 = arith.truncf %8 : vector<32x128xf32> to vector<32x128xbf16>
    %cst_9 = arith.constant dense<0.000000e+00> : vector<32x128xf32>
    %12 = tpu.matmul %10, %11, %cst_9 {dimension_numbers = #tpu.dot_dimension_numbers<[1], [0], [0], [1], [0, 0, 1, 1], [], []>} : vector<32x32xbf16>, vector<32x128xbf16>, vector<32x128xf32> -> vector<32x128xf32>
    %c0_10 = arith.constant 0 : index
    %c0_11 = arith.constant 0 : index
    %c0_12 = arith.constant 0 : index
    %13 = vector.load %arg6[%c0_10, %c0_11, %c0_12] : memref<2x32x1xf32, #tpu.memory_space<vmem>>, vector<1x32x1xf32>
    %14 = vector.shape_cast %13 : vector<1x32x1xf32> to vector<32x1xf32>
    %15 = vector.broadcast %14 : vector<32x1xf32> to vector<32x128xf32>
    %16 = arith.addf %12, %15 : vector<32x128xf32>
    %cst_13 = arith.constant 0.000000e+00 : f32
    %17 = vector.broadcast %cst_13 : f32 to vector<32x128xf32>
    %18 = arith.maximumf %16, %17 : vector<32x128xf32>
    %c0_14 = arith.constant 0 : index
    %c0_15 = arith.constant 0 : index
    %c0_16 = arith.constant 0 : index
    %19 = vector.load %arg7[%c0_14, %c0_15, %c0_16] : memref<2x32x32xbf16, #tpu.memory_space<vmem>>, vector<1x32x32xbf16>
    %20 = vector.shape_cast %19 : vector<1x32x32xbf16> to vector<32x32xbf16>
    %21 = arith.truncf %18 : vector<32x128xf32> to vector<32x128xbf16>
    %cst_17 = arith.constant dense<0.000000e+00> : vector<32x128xf32>
    %22 = tpu.matmul %20, %21, %cst_17 {dimension_numbers = #tpu.dot_dimension_numbers<[1], [0], [0], [1], [0, 0, 1, 1], [], []>} : vector<32x32xbf16>, vector<32x128xbf16>, vector<32x128xf32> -> vector<32x128xf32>
    %c0_18 = arith.constant 0 : index
    %c0_19 = arith.constant 0 : index
    %c0_20 = arith.constant 0 : index
    %23 = vector.load %arg8[%c0_18, %c0_19, %c0_20] : memref<2x32x1xf32, #tpu.memory_space<vmem>>, vector<1x32x1xf32>
    %24 = vector.shape_cast %23 : vector<1x32x1xf32> to vector<32x1xf32>
    %25 = vector.broadcast %24 : vector<32x1xf32> to vector<32x128xf32>
    %26 = arith.addf %22, %25 : vector<32x128xf32>
    %cst_21 = arith.constant 0.000000e+00 : f32
    %27 = vector.broadcast %cst_21 : f32 to vector<32x128xf32>
    %28 = arith.maximumf %26, %27 : vector<32x128xf32>
    %c0_22 = arith.constant 0 : index
    %c0_23 = arith.constant 0 : index
    %c0_24 = arith.constant 0 : index
    %29 = vector.load %arg9[%c0_22, %c0_23, %c0_24] : memref<2x32x1xf32, #tpu.memory_space<vmem>>, vector<1x32x1xf32>
    %30 = vector.shape_cast %29 : vector<1x32x1xf32> to vector<32x1xf32>
    %31 = vector.broadcast %30 : vector<32x1xf32> to vector<32x128xf32>
    %32 = arith.mulf %28, %31 : vector<32x128xf32>
    %cst_25 = arith.constant dense<0.000000e+00> : vector<128xf32>
    %33 = vector.multi_reduction <add>, %32, %cst_25 [0] : vector<32x128xf32> to vector<128xf32>
    %34 = vector.shape_cast %33 : vector<128xf32> to vector<1x128xf32>
    %c0_26 = arith.constant 0 : index
    %c0_27 = arith.constant 0 : index
    %c0_28 = arith.constant 0 : index
    %35 = vector.load %arg10[%c0_26, %c0_27, %c0_28] : memref<2x1x1xf32, #tpu.memory_space<vmem>>, vector<1x1x1xf32>
    %36 = vector.shape_cast %35 : vector<1x1x1xf32> to vector<1x1xf32>
    %37 = vector.broadcast %36 : vector<1x1xf32> to vector<1x128xf32>
    %38 = arith.addf %34, %37 : vector<1x128xf32>
    %39 = vector.extract_strided_slice %7 {offsets = [32, 0], sizes = [32, 128], strides = [1, 1]} : vector<64x128xf32> to vector<32x128xf32>
    %c1 = arith.constant 1 : index
    %c0_29 = arith.constant 0 : index
    %c0_30 = arith.constant 0 : index
    %40 = vector.load %arg5[%c1, %c0_29, %c0_30] : memref<2x32x32xbf16, #tpu.memory_space<vmem>>, vector<1x32x32xbf16>
    %41 = vector.shape_cast %40 : vector<1x32x32xbf16> to vector<32x32xbf16>
    %42 = arith.truncf %39 : vector<32x128xf32> to vector<32x128xbf16>
    %cst_31 = arith.constant dense<0.000000e+00> : vector<32x128xf32>
    %43 = tpu.matmul %41, %42, %cst_31 {dimension_numbers = #tpu.dot_dimension_numbers<[1], [0], [0], [1], [0, 0, 1, 1], [], []>} : vector<32x32xbf16>, vector<32x128xbf16>, vector<32x128xf32> -> vector<32x128xf32>
    %c1_32 = arith.constant 1 : index
    %c0_33 = arith.constant 0 : index
    %c0_34 = arith.constant 0 : index
    %44 = vector.load %arg6[%c1_32, %c0_33, %c0_34] : memref<2x32x1xf32, #tpu.memory_space<vmem>>, vector<1x32x1xf32>
    %45 = vector.shape_cast %44 : vector<1x32x1xf32> to vector<32x1xf32>
    %46 = vector.broadcast %45 : vector<32x1xf32> to vector<32x128xf32>
    %47 = arith.addf %43, %46 : vector<32x128xf32>
    %cst_35 = arith.constant 0.000000e+00 : f32
    %48 = vector.broadcast %cst_35 : f32 to vector<32x128xf32>
    %49 = arith.maximumf %47, %48 : vector<32x128xf32>
    %c1_36 = arith.constant 1 : index
    %c0_37 = arith.constant 0 : index
    %c0_38 = arith.constant 0 : index
    %50 = vector.load %arg7[%c1_36, %c0_37, %c0_38] : memref<2x32x32xbf16, #tpu.memory_space<vmem>>, vector<1x32x32xbf16>
    %51 = vector.shape_cast %50 : vector<1x32x32xbf16> to vector<32x32xbf16>
    %52 = arith.truncf %49 : vector<32x128xf32> to vector<32x128xbf16>
    %cst_39 = arith.constant dense<0.000000e+00> : vector<32x128xf32>
    %53 = tpu.matmul %51, %52, %cst_39 {dimension_numbers = #tpu.dot_dimension_numbers<[1], [0], [0], [1], [0, 0, 1, 1], [], []>} : vector<32x32xbf16>, vector<32x128xbf16>, vector<32x128xf32> -> vector<32x128xf32>
    %c1_40 = arith.constant 1 : index
    %c0_41 = arith.constant 0 : index
    %c0_42 = arith.constant 0 : index
    %54 = vector.load %arg8[%c1_40, %c0_41, %c0_42] : memref<2x32x1xf32, #tpu.memory_space<vmem>>, vector<1x32x1xf32>
    %55 = vector.shape_cast %54 : vector<1x32x1xf32> to vector<32x1xf32>
    %56 = vector.broadcast %55 : vector<32x1xf32> to vector<32x128xf32>
    %57 = arith.addf %53, %56 : vector<32x128xf32>
    %cst_43 = arith.constant 0.000000e+00 : f32
    %58 = vector.broadcast %cst_43 : f32 to vector<32x128xf32>
    %59 = arith.maximumf %57, %58 : vector<32x128xf32>
    %c1_44 = arith.constant 1 : index
    %c0_45 = arith.constant 0 : index
    %c0_46 = arith.constant 0 : index
    %60 = vector.load %arg9[%c1_44, %c0_45, %c0_46] : memref<2x32x1xf32, #tpu.memory_space<vmem>>, vector<1x32x1xf32>
    %61 = vector.shape_cast %60 : vector<1x32x1xf32> to vector<32x1xf32>
    %62 = vector.broadcast %61 : vector<32x1xf32> to vector<32x128xf32>
    %63 = arith.mulf %59, %62 : vector<32x128xf32>
    %cst_47 = arith.constant dense<0.000000e+00> : vector<128xf32>
    %64 = vector.multi_reduction <add>, %63, %cst_47 [0] : vector<32x128xf32> to vector<128xf32>
    %65 = vector.shape_cast %64 : vector<128xf32> to vector<1x128xf32>
    %c1_48 = arith.constant 1 : index
    %c0_49 = arith.constant 0 : index
    %c0_50 = arith.constant 0 : index
    %66 = vector.load %arg10[%c1_48, %c0_49, %c0_50] : memref<2x1x1xf32, #tpu.memory_space<vmem>>, vector<1x1x1xf32>
    %67 = vector.shape_cast %66 : vector<1x1x1xf32> to vector<1x1xf32>
    %68 = vector.broadcast %67 : vector<1x1xf32> to vector<1x128xf32>
    %69 = arith.addf %65, %68 : vector<1x128xf32>
    %70 = tpu.concatenate %38, %69 in 0 : vector<1x128xf32>, vector<1x128xf32> -> vector<2x128xf32>
    %c0_51 = arith.constant 0 : index
    %c0_52 = arith.constant 0 : index
    %c0_53 = arith.constant 0 : index
    %71 = vector.load %arg11[%c0_51, %c0_52, %c0_53] : memref<1x2x128xf32, #tpu.memory_space<vmem>>, vector<1x2x128xf32>
    %72 = vector.shape_cast %71 : vector<1x2x128xf32> to vector<2x128xf32>
    %73 = vector.shape_cast %70 : vector<2x128xf32> to vector<1x2x128xf32>
    tpu.vector_store %arg11[%c0_51, %c0_52, %c0_53], %73 {strides = array<i32>} : memref<1x2x128xf32, #tpu.memory_space<vmem>>, vector<1x2x128xf32>,
    return
  }
  func.func @transform_0(%arg0: i32, %arg1: i32) -> (i32, i32) {
    %c0_i32 = arith.constant 0 : i32
    %c0_i32_0 = arith.constant 0 : i32
    return %c0_i32, %arg1 : i32, i32
  }
  func.func @transform_1(%arg0: i32, %arg1: i32) -> (i32, i32) {
    %c0_i32 = arith.constant 0 : i32
    %c0_i32_0 = arith.constant 0 : i32
    return %arg0, %c0_i32 : i32, i32
  }
  func.func @transform_2(%arg0: i32, %arg1: i32) -> (i32, i32) {
    %c0_i32 = arith.constant 0 : i32
    %c0_i32_0 = arith.constant 0 : i32
    return %arg0, %c0_i32 : i32, i32
  }
  func.func @transform_3(%arg0: i32, %arg1: i32) -> (i32, i32, i32) {
    %c0_i32 = arith.constant 0 : i32
    %c0_i32_0 = arith.constant 0 : i32
    %c0_i32_1 = arith.constant 0 : i32
    return %arg0, %c0_i32, %c0_i32_0 : i32, i32, i32
  }
  func.func @transform_4(%arg0: i32, %arg1: i32) -> (i32, i32, i32) {
    %c0_i32 = arith.constant 0 : i32
    %c0_i32_0 = arith.constant 0 : i32
    %c0_i32_1 = arith.constant 0 : i32
    return %arg0, %c0_i32, %c0_i32_0 : i32, i32, i32
  }
  func.func @transform_5(%arg0: i32, %arg1: i32) -> (i32, i32, i32) {
    %c0_i32 = arith.constant 0 : i32
    %c0_i32_0 = arith.constant 0 : i32
    %c0_i32_1 = arith.constant 0 : i32
    return %arg0, %c0_i32, %c0_i32_0 : i32, i32, i32
  }
  func.func @transform_6(%arg0: i32, %arg1: i32) -> (i32, i32, i32) {
    %c0_i32 = arith.constant 0 : i32
    %c0_i32_0 = arith.constant 0 : i32
    %c0_i32_1 = arith.constant 0 : i32
    return %arg0, %c0_i32, %c0_i32_0 : i32, i32, i32
  }
  func.func @transform_7(%arg0: i32, %arg1: i32) -> (i32, i32, i32) {
    %c0_i32 = arith.constant 0 : i32
    %c0_i32_0 = arith.constant 0 : i32
    %c0_i32_1 = arith.constant 0 : i32
    return %arg0, %c0_i32, %c0_i32_0 : i32, i32, i32
  }
  func.func @transform_8(%arg0: i32, %arg1: i32) -> (i32, i32, i32) {
    %c0_i32 = arith.constant 0 : i32
    %c0_i32_0 = arith.constant 0 : i32
    %c0_i32_1 = arith.constant 0 : i32
    return %arg0, %c0_i32, %c0_i32_0 : i32, i32, i32
  }
  func.func @transform_9(%arg0: i32, %arg1: i32) -> (i32, i32, i32) {
    %c0_i32 = arith.constant 0 : i32
    %c0_i32_0 = arith.constant 0 : i32
    return %arg0, %c0_i32, %arg1 : i32, i32, i32
  }
}

</mosaic_0001>

<bundles_post_ra>
// kernel: vectorized_critic_forward.1
= control target key start
LH: loop header
LB: loop body
LE: loop exit
PB: predicated region body
PF: predicated region fallthrough
CT: control target
= control target key end

     0   :  { %14 = vsyncpa [#allocation3], 0  ;;  %s1895_s0 = inlined_call_operand.vmem [shape: bf16[12,128], index: 0, kind: input, shape index: {}]   ;;  %s1896_s1 = inlined_call_operand.vmem [shape: bf16[128,12], index: 1, kind: input, shape index: {}]   ;;  %s1897_s2 = inlined_call_operand.vmem [shape: f32[128,1], index: 2, kind: input, shape index: {}]   ;;  %s1898_s3 = inlined_call_operand.vmem [shape: bf16[4,32,32], index: 3, kind: input, shape index: {}]   ;;  %s1899_s4 = inlined_call_operand.vmem [shape: f32[4,32,1], index: 4, kind: input, shape index: {}]   ;;  %s1900_s5 = inlined_call_operand.vmem [shape: bf16[4,32,32], index: 5, kind: input, shape index: {}]   ;;  %s1901_s6 = inlined_call_operand.vmem [shape: f32[4,32,1], index: 6, kind: input, shape index: {}]   ;;  %s1902_s7 = inlined_call_operand.vmem [shape: f32[4,32,1], index: 7, kind: input, shape index: {}]   ;;  %s1903_s8 = inlined_call_operand.vmem [shape: f32[4,1,1], index: 8, kind: input, shape index: {}]   ;;  %s1904_s9 = inlined_call_operand.hbm [shape: f32[2,2,128], index: 9, kind: output, shape index: {}]  }
   0x1   :  { %16 = vsyncpa [#allocation3 + $0x1], 0  ;;  %s1732_s30 = smov 0   ;;  %s1734_s10 = smov 0  }
   0x2   :  { %s1736_s11 = smov 0   ;;  %s1738_s12 = smov 0  }
   0x3   :  { %s1740_s13 = smov 0   ;;  %s1742_s14 = smov 0  }
   0x4 LB: > { %s1385_s15 = sadd.s32 4294967295, %s1678_s14   ;;  %s1386_s16 = sadd.s32 4294967294, %s1678_s14   ;;  %s1678_s14 = sphi %s1742_s14, %s22_s14   ;;  %s1674_s13 = sphi %s1740_s13, %s1911_s13   ;;  %s1670_s12 = sphi %s1738_s12, %s1910_s12   ;;  %s1666_s11 = sphi %s1736_s11, %s1909_s11   ;;  %s1662_s10 = sphi %s1734_s10, %s1908_s10   ;;  %s1658_s30 = sphi %s1732_s30, %s1907_s30  }
   0x5   : > { %s34_s17 = sadd.s32 1, %s1674_s13  ;;  %s277_s18 = sadd.s32 1, %s1666_s11 }
   0x6   : > { %p36_p0 = scmp.ge.s32.totalorder %s34_s17, 2  ;;  %p287_p1 = scmp.ne.s32.totalorder %s1666_s11, %s1662_s10 }
   0x7   : > { %p288_p2 = scmp.eq.s32.totalorder %s1385_s15, 1  ;;  %p293_p3 = scmp.ne.s32.totalorder %s1662_s10, %s1658_s30 }
   0x8   : > { %s1913_s17 = smov (%p36_p0, %s34_s17), 0  ;;  %p294_p5 = scmp.eq.s32.totalorder %s1386_s16, 1 }
   0x9   : > { %p1772_p4 = por %p288_p2, %p287_p1  ;;  %s272_s20 = ssub.s32 %s1674_s13, %s1913_s17 }
   0xa   : > { %p1390_p6 = scmp.ge.s32.totalorder %s1678_s14, 1  ;;  %p275_p7 = scmp.eq.s32.totalorder %s272_s20, 0 }
   0xb   : > { %p1779_p8 = por %p294_p5, %p293_p3  ;;  %p395_p9 = scmp.lt.s32.totalorder %s1678_s14, 3 }
   0xc   : > { %s1785_s22 = scalar_select %p275_p7, %s1666_s11, %s277_s18  }
   0xd   : > { %p396_p10 = pnand %p1390_p6, %p395_p9 }
   0xe   : > { %s1392_s25 = sshll.u32 (!%p396_p10), %s1670_s12, 3  ;;  %s1396_s23 = sshll.u32 (!%p396_p10), %s1670_s12, 1 }
   0xf   : > { %399 = sbr.rel (%p396_p10) target bundleno = 694 (0x2b6), region = 56  ;;  %p479_p11 = scmp.lt.s32.totalorder (!%p396_p10), %s1392_s25, 15 }
  0x10   : > { %p491_p12 = scmp.lt.s32.totalorder (!%p396_p10), %s1396_s23, 3 }
  0x14   : > { %v1589_v0 = vld [vmem:[%s1895_s0] sm:$0x3f]   ;;  %vm627_vm0 = vcmask 1045504   ;;  %v1680_v2 = vmov 0   ;;  %s1915_s25 = smov (!%p479_p11, %s1392_s25), 15  ;;  %vm614_vm1 = vcmask 97280  }
  0x15   : > { %1530 = vmatprep.subr.msk.bf16.mxu0 %vm627_vm0, %v1589_v0  ;;  %v629_v1 = vsel %vm627_vm0, %v1589_v0, 0  ;;  %1588 = vset.pattern.permute.xlu1 %v1680_v2  ;;  %s1393_s26 = sshll.u32 %s1915_s25, 2  ;;  %s1395_s27 = sshll.u32 %s1915_s25, 3  ;;  %vm744_vm2 = vcmask 261120   ;;  %vm1203_vm3 = vcmask 1040384  }
  0x16   : > { %1489 = vmatpush3.bf16.msra.mxu0 %v629_v1  ;;  %1587 = vset.pattern.permute.xlu0 %v1680_v2  ;;  %s482_s15 = scalar_lea.vmem %s1896_s1, %s1393_s26  ;;  %s488_s20 = scalar_lea.vmem %s1897_s2, %s1395_s27 }
  0x17   : > { %v1590_v3 = vld [vmem:[%s482_s15] sm:$0xff]   ;;  %v1591_v4 = vld [vmem:[%s482_s15 + $0x8] sm:$0xff]   ;;  %v1592_v5 = vld [vmem:[%s482_s15 + $0x10] sm:$0xff]   ;;  %s1917_s23 = smov (!%p491_p12, %s1396_s23), 3  ;;  %s1459_s25 = sshll.u32 %s1670_s12, 5 }
  0x18   : > { %1490 = vmatprep.mubr.msk.bf16.mxu0 %vm614_vm1, %v1590_v3  ;;  %v543_v6 = vld [vmem:[%s488_s20 + $0x10] sm:$0xff]  ;;  %v541_v7 = vld [vmem:[%s488_s20] sm:$0xff]  ;;  %v544_v8 = vld [vmem:[%s488_s20 + $0x18] sm:$0xff]  ;;  %s1805_s24 = sshll.u32 %s1917_s23, 5  ;;  %s528_s26 = scalar_lea.vmem %s1903_s8, %s1917_s23 }
  0x19   : > { %1491 = vmatmul.mubr.msk.bf16.vlgmr.msra.gmra.mxu0 %vm614_vm1, %v1591_v4  ;;  %561 = vperm.xlu0 %1587, %v543_v6   ;;  %v542_v9 = vld [vmem:[%s488_s20 + $0x8] sm:$0xff]  ;;  %v1593_v10 = vld [vmem:[%s482_s15 + $0x18] sm:$0xff]   ;;  %v547_v11 = vld [vmem:[%s488_s20 + $0x30] sm:$0xff]  ;;  %s502_s27 = scalar_lea.vmem %s1899_s4, %s1805_s24  ;;  %s516_s15 = scalar_lea.vmem %s1901_s6, %s1805_s24 }
  0x1a   : > { %1494 = vmatprep.mubr.msk.bf16.mxu0 %vm614_vm1, %v1592_v5  ;;  %551 = vperm.xlu1 %1588, %v541_v7   ;;  %v548_v12 = vld [vmem:[%s488_s20 + $0x38] sm:$0xff]  ;;  %v545_v13 = vld [vmem:[%s488_s20 + $0x20] sm:$0xff]  ;;  %v546_v14 = vld [vmem:[%s488_s20 + $0x28] sm:$0xff]  ;;  %s523_s20 = scalar_lea.vmem %s1902_s7, %s1805_s24  ;;  %s1681_s12 = smov [#allocation2]  }
  0x1b   : > { %v712_v15 = vld [vmem:[%s502_s27 + $0x10] sm:$0xff]  ;;  %v713_v16 = vld [vmem:[%s502_s27 + $0x18] sm:$0xff]  ;;  %v710_v17 = vld [vmem:[%s502_s27] sm:$0xff] }
  0x1c   : > { %v711_v18 = vld [vmem:[%s502_s27 + $0x8] sm:$0xff]  ;;  %v1435_v19 = vld [vmem:[%s502_s27 + $0x30] sm:$0xff]  ;;  %v1436_v20 = vld [vmem:[%s502_s27 + $0x38] sm:$0xff] }
  0x1d   : > { %566 = vperm.xlu0 %1587, %v544_v8   ;;  %v1433_v21 = vld [vmem:[%s502_s27 + $0x20] sm:$0xff]  ;;  %v1434_v22 = vld [vmem:[%s502_s27 + $0x28] sm:$0xff]  ;;  %v812_v27 = vld [vmem:[%s516_s15 + $0x10] sm:$0xff]  ;;  %s1462_s27 = sshll.u32 %s1917_s23, 4  ;;  %s471_s23 = sand.u32 1, %s1662_s10  }
  0x1e   : > { %556 = vperm.xlu1 %1588, %v542_v9   ;;  %v810_v23 = vld [vmem:[%s516_s15] sm:$0xff]  ;;  %v811_v24 = vld [vmem:[%s516_s15 + $0x8] sm:$0xff]  ;;  %v1447_v28 = vld [vmem:[%s516_s15 + $0x30] sm:$0xff]  ;;  %s1391_s24 = sshll.u32 %s471_s23, 1  ;;  %s1207_s16 = scalar_lea.sflag [#allocation3], %s471_s23 }
  0x1f   : > { %v1445_v25 = vld [vmem:[%s516_s15 + $0x20] sm:$0xff]  ;;  %v1446_v26 = vld [vmem:[%s516_s15 + $0x28] sm:$0xff]  ;;  %v813_v29 = vld [vmem:[%s516_s15 + $0x18] sm:$0xff] }
  0x20   : > { %v903_v30 = vld [vmem:[%s523_s20] sm:$0xff]  ;;  %v904_v31 = vld [vmem:[%s523_s20 + $0x8] sm:$0xff]  ;;  %v1448_v32 = vld [vmem:[%s516_s15 + $0x38] sm:$0xff]  ;;  %s1827_s15 = scalar_lea.vmem %s1898_s3, %s1462_s27 }
  0x21   : > { %1495 = vmatmul.mubr.msk.bf16.gmra.mxu0 %vm614_vm1, %v1593_v10  ;;  %581 = vperm.xlu0 %1587, %v547_v11   ;;  %v1453_v33 = vld [vmem:[%s523_s20 + $0x20] sm:$0xff]  ;;  %v1454_v34 = vld [vmem:[%s523_s20 + $0x28] sm:$0xff]  ;;  %v905_v35 = vld [vmem:[%s523_s20 + $0x10] sm:$0xff] }
  0x22   : > { %586 = vperm.xlu1 %1588, %v548_v12   ;;  %v1455_v36 = vld [vmem:[%s523_s20 + $0x30] sm:$0xff]  ;;  %v906_v37 = vld [vmem:[%s523_s20 + $0x18] sm:$0xff]  ;;  %v940_v39 = vld [vmem:[%s528_s26] sm:$0x1] }
  0x23   : > { %v1456_v38 = vld [vmem:[%s523_s20 + $0x38] sm:$0xff]  ;;  %v1457_v40 = vld [vmem:[%s528_s26 + $0x1] sm:$0x1]  ;;  %s1834_s20 = scalar_lea.vmem %s1900_s5, %s1462_s27  ;;  %v1596_v42 = vld [vmem:[%s1827_s15 + $0x10] sm:$0xff]   ;;  %s473_s26 = scalar_lea.vmem [#allocation2], %s1391_s24 }
  0x24   : > { %v1594_v41 = vld [vmem:[%s1827_s15] sm:$0xff]   ;;  %1518 = vmatprep.mubr.msk.bf16.mxu0 %vm744_vm2, %v1596_v42  ;;  %v1595_v11 = vld [vmem:[%s1827_s15 + $0x8] sm:$0xff]   ;;  %s1221_s27 = sshll.u32 %s473_s26, 4  ;;  %s1222_s27 = int_to_ptr.vmem [resolvable:$true] %s1221_s27 }
  0x25   : > { %571 = vperm.xlu0 %1587, %v545_v13   ;;  %1502 = vmatprep.mubr.msk.bf16.mxu1 %vm744_vm2, %v1594_v41  ;;  %s1602_s18 = scalar_lea.vmem %s1222_s27, 32 }
  0x26   : > { %576 = vperm.xlu1 %1588, %v546_v14   ;;  %p1603_p13 = scmp.ne.s32.totalorder %s1222_s27, %s1602_s18 }
  0x28   : > { %p1604_p0 = pnand %p1603_p13, %p1772_p4 }
  0x29   : > { %726 = vperm.xlu0 %1587, %v712_v15  }
  0x2a   : > { %731 = vperm.xlu1 %1588, %v713_v16   ;;  %v1597_v16 = vld [vmem:[%s1827_s15 + $0x18] sm:$0xff]   ;;  %s1855_s15 = scalar_lea.hbm %s1904_s9, %s1459_s25  ;;  %p1605_p1 = pneg %p1604_p0 }
  0x2d   : > { %716 = vperm.xlu0 %1587, %v710_v17   ;;  %v1598_v17 = vld [vmem:[%s1834_s20] sm:$0xff]  }
  0x2e   : > { %721 = vperm.xlu1 %1588, %v711_v18  }
  0x31   : > { %975 = vperm.xlu0 %1587, %v1435_v19  }
  0x32   : > { %980 = vperm.xlu1 %1588, %v1436_v20  }
  0x35   : > { %965 = vperm.xlu0 %1587, %v1433_v21  }
  0x36   : > { %970 = vperm.xlu1 %1588, %v1434_v22  }
  0x39   : > { %816 = vperm.xlu0 %1587, %v810_v23  }
  0x3a   : > { %821 = vperm.xlu1 %1588, %v811_v24  }
  0x3d   : > { %1066 = vperm.xlu0 %1587, %v1445_v25  }
  0x3e   : > { %1071 = vperm.xlu1 %1588, %v1446_v26  }
  0x41   : > { %826 = vperm.xlu0 %1587, %v812_v27  }
  0x42   : > { %1076 = vperm.xlu1 %1588, %v1447_v28  }
  0x45   : > { %831 = vperm.xlu0 %1587, %v813_v29  }
  0x46   : > { %909 = vperm.xlu1 %1588, %v903_v30  }
  0x49   : > { %914 = vperm.xlu0 %1587, %v904_v31  }
  0x4a   : > { %1081 = vperm.xlu1 %1588, %v1448_v32  }
  0x4d   : > { %1160 = vperm.xlu0 %1587, %v1453_v33  }
  0x4e   : > { %1165 = vperm.xlu1 %1588, %v1454_v34  }
  0x51   : > { %919 = vperm.xlu0 %1587, %v905_v35  }
  0x52   : > { %1170 = vperm.xlu1 %1588, %v1455_v36  }
  0x55   : > { %924 = vperm.xlu0 %1587, %v906_v37  }
  0x56   : > { %1175 = vperm.xlu1 %1588, %v1456_v38  }
  0x59   : > { %943 = vperm.xlu0 %1587, %v940_v39  }
  0x5a   : > { %1195 = vperm.xlu1 %1588, %v1457_v40  }
  0x94   : > { %v562_v43 = vpop.permute.xlu0 %561 }
  0x95   : > { %v552_v44 = vpop.permute.xlu1 %551 }
  0x98   : > { %v567_v45 = vpop.permute.xlu0 %566 }
  0x99   : > { %v557_v47 = vpop.permute.xlu1 %556 }
  0x9c   : > { %v582_v53 = vpop.permute.xlu0 %581 }
  0x9d   : > { %v587_v58 = vpop.permute.xlu1 %586 }
  0xa0   : > { %v572_v2 = vpop.permute.xlu0 %571 }
  0xa1   : > { %v577_v6 = vpop.permute.xlu1 %576 }
  0xa4   : > { %v727_v18 = vpop.permute.xlu0 %726 }
  0xa5   : > { %v732_v19 = vpop.permute.xlu1 %731 }
  0xa8   : > { %v717_v20 = vpop.permute.xlu0 %716 }
  0xa9   : > { %v722_v22 = vpop.permute.xlu1 %721 }
  0xac   : > { %v976_v28 = vpop.permute.xlu0 %975 }
  0xad   : > { %v981_v33 = vpop.permute.xlu1 %980 }
  0xb0   : > { %v966_v41 = vpop.permute.xlu0 %965 }
  0xd9   : > { %v1492_v46 = vpop.f32.mrf.mxu0 }
  0xda   : > { %v674_v49 = vadd.f32 %v1492_v46, %v562_v43 }
  0xdb   : > { %v665_v48 = vpop.f32.mrf.mxu0 }
  0xdc   : > { %v666_v51 = vadd.f32 %v665_v48, %v552_v44  ;;  %v698_v55 = vmax.f32 %v674_v49, 0.0 }
  0xdd   : > { %v1493_v50 = vpop.f32.mrf.mxu0 }
  0xde   : > { %v677_v52 = vadd.f32 %v1493_v50, %v567_v45  ;;  %v696_v60 = vmax.f32 %v666_v51, 0.0  ;;  %v971_v45 = vpop.permute.xlu1 %970  ;;  %v1599_v50 = vld [vmem:[%s1834_s20 + $0x8] sm:$0xff]   ;;  %v1600_v51 = vld [vmem:[%s1834_s20 + $0x10] sm:$0xff]  }
  0xdf   : > { %v668_v54 = vpop.f32.mrf.mxu0 }
  0xe0   : > { %v699_v56 = vmax.f32 %v677_v52, 0.0  ;;  %v669_v57 = vadd.f32 %v668_v54, %v557_v47 }
  0xe1   : > { %v1496_v59 = vpop.f32.mrf.mxu0 }
  0xe2   : > { %v697_v61 = vmax.f32 %v669_v57, 0.0  ;;  %v709_v62 = vpack.c.bf16 %v699_v56, %v698_v55  ;;  %v690_v1 = vadd.f32 %v1496_v59, %v582_v53  ;;  %v1601_v56 = vld [vmem:[%s1834_s20 + $0x18] sm:$0xff]   ;;  %v817_v57 = vpop.permute.xlu0 %816  ;;  %v822_v59 = vpop.permute.xlu1 %821  ;;  %s1606_s20 = sshll.u32 %s1681_s12, 4  ;;  %s1607_s20 = int_to_ptr.vmem [resolvable:$false] %s1606_s20 }
  0xe3   : > { %v681_v63 = vpop.f32.mrf.mxu0  ;;  %s1608_s24 = scalar_lea.vmem %s1607_s20, 64  ;;  %p1609_p2 = scmp.lt.s32.totalorder %s1222_s27, %s1607_s20 }
  0xe4   : > { %v708_v0 = vpack.c.bf16 %v697_v61, %v696_v60  ;;  %1498 = vmatprep.subr.bf16.mxu1 %v709_v62  ;;  %v682_v4 = vadd.f32 %v681_v63, %v572_v2  ;;  %v702_v8 = vmax.f32 %v690_v1, 0.0  ;;  %p1610_p3 = scmp.lt.s32.totalorder %s1608_s24, %s1602_s18 }
  0xe5   : > { %v1497_v3 = vpop.f32.mrf.mxu0  ;;  %1499 = vmatpush3.bf16.msra.mxu1 %v709_v62 }
  0xe6   : > { %v693_v5 = vadd.f32 %v1497_v3, %v587_v58  ;;  %1500 = vmatprep.subr.bf16.mxu1 %v708_v0  ;;  %v700_v12 = vmax.f32 %v682_v4, 0.0  ;;  %v1067_v58 = vpop.permute.xlu0 %1066  ;;  %v1072_v61 = vpop.permute.xlu1 %1071  ;;  %p1611_p5 = por %p1610_p3, %p1609_p2 }
  0xe7   : > { %v684_v7 = vpop.f32.mrf.mxu0 }
  0xe8   : > { %v703_v9 = vmax.f32 %v693_v5, 0.0  ;;  %v685_v10 = vadd.f32 %v684_v7, %v577_v6  ;;  %p1612_p6 = pnand %p1611_p5, %p1605_p1 }
  0xe9   : > { %1501 = vmatpush3.bf16.msra.mxu1 %v708_v0 }
  0xea   : > { %v957_v13 = vpack.c.bf16 %v703_v9, %v702_v8  ;;  %v701_v14 = vmax.f32 %v685_v10, 0.0  ;;  %v827_v60 = vpop.permute.xlu0 %826  ;;  %v1077_v63 = vpop.permute.xlu1 %1076 }
  0xec   : > { %v956_v15 = vpack.c.bf16 %v701_v14, %v700_v12  ;;  %1503 = vmatmul.mubr.msk.bf16.vlgmr.msra.gmra.mxu1 %vm744_vm2, %v1595_v11  ;;  %1514 = vmatprep.subr.bf16.mxu0 %v957_v13 }
  0xed   : > { %1515 = vmatpush3.bf16.msra.mxu0 %v957_v13  ;;  %1510 = vmatprep.mubr.msk.bf16.mxu1 %vm744_vm2, %v1598_v17 }
  0xee   : > { %1516 = vmatprep.subr.bf16.mxu0 %v956_v15  ;;  %v832_v62 = vpop.permute.xlu0 %831  ;;  %v910_v1 = vpop.permute.xlu1 %909 }
  0xf1   : > { %1517 = vmatpush3.bf16.msra.mxu0 %v956_v15 }
  0xf2   : > { %v915_v0 = vpop.permute.xlu0 %914  ;;  %v1082_v6 = vpop.permute.xlu1 %1081 }
  0xf4   : > { %1519 = vmatmul.mubr.msk.bf16.vlgmr.msra.gmra.mxu0 %vm744_vm2, %v1597_v16 }
  0xf6   : > { %v1161_v3 = vpop.permute.xlu0 %1160  ;;  %v1166_v17 = vpop.permute.xlu1 %1165 }
  0xfa   : > { %v920_v11 = vpop.permute.xlu0 %919 }
 0x1ac   : > { %v1504_v21 = vpop.f32.mrf.mxu1 }
 0x1ad   : > { %v794_v24 = vadd.f32 %v1504_v21, %v727_v18 }
 0x1ae   : > { %v785_v23 = vpop.f32.mrf.mxu1 }
 0x1af   : > { %v786_v26 = vadd.f32 %v785_v23, %v717_v20  ;;  %v802_v30 = vmax.f32 %v794_v24, 0.0  ;;  %v925_v24 = vpop.permute.xlu0 %924 }
 0x1b0   : > { %v1505_v25 = vpop.f32.mrf.mxu1 }
 0x1b1   : > { %v797_v27 = vadd.f32 %v1505_v25, %v732_v19  ;;  %v800_v35 = vmax.f32 %v786_v26, 0.0 }
 0x1b2   : > { %v788_v29 = vpop.f32.mrf.mxu1 }
 0x1b3   : > { %v803_v31 = vmax.f32 %v797_v27, 0.0  ;;  %v789_v32 = vadd.f32 %v788_v29, %v722_v22 }
 0x1b4   : > { %v1520_v34 = vpop.f32.mrf.mxu0 }
 0x1b5   : > { %v809_v36 = vpack.c.bf16 %v803_v31, %v802_v30  ;;  %v801_v37 = vmax.f32 %v789_v32, 0.0  ;;  %v1042_v40 = vadd.f32 %v1520_v34, %v976_v28  ;;  %v1171_v34 = vpop.permute.xlu1 %1170 }
 0x1b6   : > { %v1033_v38 = vpop.f32.mrf.mxu0 }
 0x1b7   : > { %v808_v39 = vpack.c.bf16 %v801_v37, %v800_v35  ;;  %1506 = vmatprep.subr.bf16.mxu1 %v809_v36  ;;  %v1034_v43 = vadd.f32 %v1033_v38, %v966_v41  ;;  %v1050_v47 = vmax.f32 %v1042_v40, 0.0 }
 0x1b8   : > { %1507 = vmatpush3.bf16.msra.mxu1 %v809_v36  ;;  %v1521_v42 = vpop.f32.mrf.mxu0 }
 0x1b9   : > { %v1045_v44 = vadd.f32 %v1521_v42, %v981_v33  ;;  %1508 = vmatprep.subr.bf16.mxu1 %v808_v39  ;;  %v1048_v52 = vmax.f32 %v1034_v43, 0.0 }
 0x1ba   : > { %v1036_v46 = vpop.f32.mrf.mxu0 }
 0x1bb   : > { %v1051_v48 = vmax.f32 %v1045_v44, 0.0  ;;  %v1037_v49 = vadd.f32 %v1036_v46, %v971_v45  ;;  %v1176_v45 = vpop.permute.xlu1 %1175 }
 0x1bc   : > { %1509 = vmatpush3.bf16.msra.mxu1 %v808_v39 }
 0x1bd   : > { %v1058_v53 = vpack.c.bf16 %v1051_v48, %v1050_v47  ;;  %v1049_v54 = vmax.f32 %v1037_v49, 0.0  ;;  %v946_v49 = vlaneseq }
 0x1bf   : > { %v1057_v55 = vpack.c.bf16 %v1049_v54, %v1048_v52  ;;  %1511 = vmatmul.mubr.msk.bf16.vlgmr.msra.gmra.mxu1 %vm744_vm2, %v1599_v50  ;;  %1522 = vmatprep.subr.bf16.mxu1 %v1058_v53 }
 0x1c0   : > { %1523 = vmatpush3.bf16.msra.mxu1 %v1058_v53  ;;  %1526 = vmatprep.mubr.msk.bf16.mxu1 %vm744_vm2, %v1600_v51  ;;  %v947_v53 = vshrl.u32 %v946_v49, 7 }
 0x1c1   : > { %1524 = vmatprep.subr.bf16.mxu1 %v1057_v55 }
 0x1c4   : > { %1525 = vmatpush3.bf16.msra.mxu1 %v1057_v55 }
 0x1c7   : > { %1527 = vmatmul.mubr.msk.bf16.vlgmr.msra.gmra.mxu1 %vm744_vm2, %v1601_v56 }
 0x27f   : > { %v1512_v2 = vpop.f32.mrf.mxu1 }
 0x280   : > { %v893_v8 = vadd.f32 %v1512_v2, %v827_v60  ;;  %v1196_v60 = vpop.permute.xlu1 %1195 }
 0x281   : > { %v884_v4 = vpop.f32.mrf.mxu1 }
 0x282   : > { %v885_v5 = vadd.f32 %v884_v4, %v817_v57  ;;  %v901_v15 = vmax.f32 %v893_v8, 0.0  ;;  %v948_v57 = vsub.s32 0, %v947_v53 }
 0x283   : > { %v1513_v7 = vpop.f32.mrf.mxu1 }
 0x284   : > { %v896_v9 = vadd.f32 %v1513_v7, %v832_v62  ;;  %v899_v12 = vmax.f32 %v885_v5, 0.0  ;;  %v929_v25 = vmul.f32 %v920_v11, %v901_v15 }
 0x285   : > { %v887_v10 = vpop.f32.mrf.mxu1 }
 0x286   : > { %v888_v13 = vadd.f32 %v887_v10, %v822_v59  ;;  %v902_v18 = vmax.f32 %v896_v9, 0.0  ;;  %v927_v20 = vmul.f32 %v910_v1, %v899_v12  ;;  %v944_v59 = vpop.permute.xlu0 %943 }
 0x287   : > { %v1528_v14 = vpop.f32.mrf.mxu1 }
 0x288   : > { %v900_v16 = vmax.f32 %v888_v13, 0.0  ;;  %v1143_v27 = vadd.f32 %v1528_v14, %v1077_v63  ;;  %v930_v28 = vmul.f32 %v925_v24, %v902_v18  ;;  %v949_v63 = vrot.slane %v944_v59, %v948_v57 }
 0x289   : > { %v1134_v19 = vpop.f32.mrf.mxu1 }
 0x28a   : > { %v928_v21 = vmul.f32 %v915_v0, %v900_v16  ;;  %v1135_v22 = vadd.f32 %v1134_v19, %v1067_v58  ;;  %v1151_v36 = vmax.f32 %v1143_v27, 0.0  ;;  %v1201_v0 = vrot.slane %v1196_v60, %v948_v57 }
 0x28b   : > { %v1529_v23 = vpop.f32.mrf.mxu1 }
 0x28c   : > { %v931_v26 = vadd.f32 %v928_v21, %v927_v20  ;;  %v1149_v31 = vmax.f32 %v1135_v22, 0.0  ;;  %v1146_v32 = vadd.f32 %v1529_v23, %v1082_v6  ;;  %v1180_v43 = vmul.f32 %v1171_v34, %v1151_v36 }
 0x28d   : > { %v1137_v29 = vpop.f32.mrf.mxu1 }
 0x28e   : > { %v932_v30 = vadd.f32 %v931_v26, %v929_v25  ;;  %v1138_v33 = vadd.f32 %v1137_v29, %v1072_v61  ;;  %v1178_v39 = vmul.f32 %v1161_v3, %v1149_v31  ;;  %v1152_v40 = vmax.f32 %v1146_v32, 0.0 }
 0x290   : > { %v933_v35 = vadd.f32 %v932_v30, %v930_v28  ;;  %v1150_v37 = vmax.f32 %v1138_v33, 0.0  ;;  %v1181_v47 = vmul.f32 %v1176_v45, %v1152_v40 }
 0x292   : > { %v934_v38 = vrot.slane %v933_v35, 4  ;;  %v1179_v41 = vmul.f32 %v1166_v17, %v1150_v37 }
 0x294   : > { %v935_v42 = vadd.f32 %v934_v38, %v933_v35  ;;  %v1182_v44 = vadd.f32 %v1179_v41, %v1178_v39 }
 0x296   : > { %v936_v46 = vrot.slane %v935_v42, 2  ;;  %v1183_v48 = vadd.f32 %v1182_v44, %v1180_v43 }
 0x298   : > { %v1184_v50 = vadd.f32 %v1183_v48, %v1181_v47  ;;  %v937_v52 = vadd.f32 %v936_v46, %v935_v42 }
 0x29a   : > { %v1185_v51 = vrot.slane %v1184_v50, 4  ;;  %v938_v56 = vrot.slane %v937_v52, 1 }
 0x29c   : > { %v1186_v54 = vadd.f32 %v1185_v51, %v1184_v50  ;;  %v939_v61 = vadd.f32 %v938_v56, %v937_v52 }
 0x29e   : > { %v1187_v55 = vrot.slane %v1186_v54, 2  ;;  %v950_v2 = vadd.f32 %v949_v63, %v939_v61 }
 0x2a0   : > { %v1188_v58 = vadd.f32 %v1187_v55, %v1186_v54 }
 0x2a2   : > { %v1189_v62 = vrot.slane %v1188_v58, 1 }
 0x2a4   : > { %v1190_v1 = vadd.f32 %v1189_v62, %v1188_v58 }
 0x2a6   : > { %v1202_v3 = vadd.f32 %v1201_v0, %v1190_v1 }
 0x2a8   : > { %v1204_v4 = vsel %vm1203_vm3, %v950_v2, %v1202_v3 }
 0x2a9   : > { %1205 = vst [vmem:[%s473_s26] sm:$0x3] %v1204_v4 }
 0x2aa   : > { %1615 = shalt.err (!%p1612_p6)
}
 0x2ab   : > { %s1616_s25 = scalar_lea.hbm %s1855_s15, 32  ;;  %s1620_s28 = scalar_lea.hbm %s1904_s9, 64 }
 0x2ac   : > { %p1617_p7 = scmp.ne.s32.totalorder %s1855_s15, %s1616_s25  ;;  %p1621_p11 = scmp.lt.s32.totalorder %s1855_s15, %s1904_s9 }
 0x2ad   : > { %p1622_p12 = scmp.lt.s32.totalorder %s1620_s28, %s1616_s25 }
 0x2ae   : > { %p1618_p9 = pnand %p1617_p7, %p1772_p4 }
 0x2af   : > { %p1623_p13 = por %p1622_p12, %p1621_p11 }
 0x2b0   : > { %p1619_p10 = pneg %p1618_p9 }
 0x2b2   : > { %p1624_p0 = pnand %p1623_p13, %p1619_p10 }
 0x2b4   : > { %1627 = shalt.err (!%p1624_p0)
}
 0x2b5   : > { %1531 = dma.vmem_to_hbm [thread:$0]  (%p1772_p4), %s1222_s27, 32, %s1855_s15, %s1207_s16  }
 0x2b6 PF: > { %p1537_p1 = scmp.ge.s32.totalorder %s1678_s14, 2  ;;  %s1233_s18 = sand.u32 1, %s1658_s30  }
 0x2b7   : > { %s1234_s20 = scalar_lea.sflag [#allocation3], %s1233_s18 }
 0x2b8   : > { %p1534_p2 = pnand %p1537_p1, %p1779_p8 }
 0x2ba   : > { %p1535_p3 = pneg %p1534_p2 }
 0x2bc   : > { %1653 = dma.done.wait (%p1535_p3), %s1234_s20, 32  }
 0x2bd   : > { %1655 = vsyncadd (%p1535_p3), %s1234_s20, 4294967264  ;;  %s22_s14 = sadd.s32 1, %s1678_s14   ;;  %s1907_s30 = smov %s1662_s10 }
 0x2be   : > { %p19_p5 = scmp.ge.s32.totalorder %s22_s14, 4   ;;  %s1908_s10 = smov %s1666_s11 }
 0x2bf   : > { %s1909_s11 = smov %s1785_s22  ;;  %s1910_s12 = smov %s1674_s13 }
 0x2c0   : > { %s1911_s13 = smov %s1913_s17  ;;  %21 = sbr.rel (!%p19_p5) target bundleno = 4 (0x4), region = 121 }
 0x2c5   :  { %1239 = vsyncpa [#allocation3], 1 }
 0x2c6   :  { %1241 = vsyncpa [#allocation3 + $0x1], 1 }

</bundles_post_ra>
